<compile_context>
chip_gen: v7x
topology: tpu7x:2x2x1
jax: 0.10.0
libtpu: 0.0.40
codegen_flags: <defaults>
</compile_context>

<pallas_src>
import jax
import jax.numpy as jnp
from jax.experimental import pallas as pl
from jax.experimental.pallas import tpu as pltpu


def _refine_kernel(x_ref, w1_ref, b1_ref, w2_ref, b2_ref, w3_ref, b3_ref,
                   w4_ref, b4_ref, o_ref):
    # x_ref:  (1, Mblk)          input pixels (Cin=1) for this spatial block
    # wK_ref: (Cout, Cin)        1x1 conv weights   bK_ref: (Cout, 1) biases
    # o_ref:  (1, Mblk)          sigmoid output
    def lrelu(h):
        return jnp.where(h > 0, h, 0.1 * h)

    x = x_ref[...]                                            # (1, Mblk)

    # conv1: Cin=1 -> outer product == broadcast multiply (pure VPU)
    h = lrelu(w1_ref[...] * x + b1_ref[...])                  # (16, Mblk)

    # conv2 / conv3: dense (16,16)@(16,Mblk) MXU matmuls, f32 accumulation
    h = lrelu(jnp.dot(w2_ref[...], h,
                      preferred_element_type=jnp.float32) + b2_ref[...])
    h = lrelu(jnp.dot(w3_ref[...], h,
                      preferred_element_type=jnp.float32) + b3_ref[...])

    # conv4 + numerically-stable sigmoid (exp on EUP, no inf intermediates)
    y = jnp.dot(w4_ref[...], h,
                preferred_element_type=jnp.float32) + b4_ref[...]   # (1, Mblk)
    e = jnp.exp(-jnp.abs(y))
    sig = jnp.where(y >= 0, 1.0 / (1.0 + e), e / (1.0 + e))
    o_ref[...] = sig.astype(o_ref.dtype)


def fpn_refine_forward(x_nchw, params):
    """Fused forward pass. x_nchw: (N, 1, H, W) float32."""
    (w1, b1), (w2, b2), (w3, b3), (w4, b4) = params
    N, C, H, W = x_nchw.shape
    assert C == 1, "FPN_Refine expects a single input channel"
    M = N * H * W

    # NCHW with C==1 flattens directly onto the lane axis: (Cin=1, N*H*W).
    x_flat = x_nchw.reshape(1, M)

    # Two spatial blocks when cleanly divisible (feeds both v7x TensorCores);
    # otherwise a single full-extent block.
    if M % 256 == 0:
        m_blk, grid = M // 2, (2,)
    else:
        m_blk, grid = M, (1,)

    full = lambda m: (0, 0)
    out = pl.pallas_call(
        _refine_kernel,
        out_shape=jax.ShapeDtypeStruct((1, M), jnp.float32),
        grid_spec=pltpu.PrefetchScalarGridSpec(
            num_scalar_prefetch=0,
            grid=grid,
            in_specs=[
                pl.BlockSpec((1, m_blk), lambda m: (0, m)),
                pl.BlockSpec(w1.shape, full), pl.BlockSpec(b1.shape, full),
                pl.BlockSpec(w2.shape, full), pl.BlockSpec(b2.shape, full),
                pl.BlockSpec(w3.shape, full), pl.BlockSpec(b3.shape, full),
                pl.BlockSpec(w4.shape, full), pl.BlockSpec(b4.shape, full),
            ],
            out_specs=pl.BlockSpec((1, m_blk), lambda m: (0, m)),
        ),
        compiler_params=pltpu.CompilerParams(
            dimension_semantics=("parallel",)),
    )(x_flat, w1, b1, w2, b2, w3, b3, w4, b4)

    # Lane-dense (1, N*H*W) slab reshapes for free back to NCHW (Cout=1).
    return out.reshape(N, 1, H, W)


def init_conv1x1_params(key, cin, cout):
    """Deterministic init matching PyTorch Conv2d(cin, cout, 1) default bounds."""
    kw, kb = jax.random.split(key)
    bound = 1.0 / jnp.sqrt(cin)  # fan_in = cin * 1 * 1
    w = jax.random.uniform(kw, (cout, cin), jnp.float32, -bound, bound)
    b = jax.random.uniform(kb, (cout, 1), jnp.float32, -bound, bound)
    return w, b


def _reference_forward(x_nchw, params):
    """Pure-JAX reference (einsum 1x1 convs) for validation."""
    def conv1x1(x, w, b):  # x NCHW, w (Cout, Cin), b (Cout, 1)
        return jnp.einsum('oc,nchw->nohw', w, x) + b.reshape(1, -1, 1, 1)

    (w1, b1), (w2, b2), (w3, b3), (w4, b4) = params
    h = jax.nn.leaky_relu(conv1x1(x_nchw, w1, b1), 0.1)
    h = jax.nn.leaky_relu(conv1x1(h, w2, b2), 0.1)
    h = jax.nn.leaky_relu(conv1x1(h, w3, b3), 0.1)
    return jax.nn.sigmoid(conv1x1(h, w4, b4))


if __name__ == "__main__":
    key = jax.random.PRNGKey(0)
    kx, k1, k2, k3, k4 = jax.random.split(key, 5)

    # Input implied by the module: Conv2d(1, 16, ...) -> NCHW (2, 1, 16, 16)
    x = jax.random.normal(kx, (2, 1, 16, 16), jnp.float32)

    params = (
        init_conv1x1_params(k1, 1, 16),
        init_conv1x1_params(k2, 16, 16),
        init_conv1x1_params(k3, 16, 16),
        init_conv1x1_params(k4, 16, 1),
    )

    out = jax.block_until_ready(fpn_refine_forward(x, params))
    assert out.shape == (2, 1, 16, 16), out.shape

    ref = jax.block_until_ready(_reference_forward(x, params))
    assert jnp.allclose(out, ref, rtol=1e-3, atol=1e-5), (
        float(jnp.max(jnp.abs(out - ref))))

    print("KERNEL_OK")
</pallas_src>

<mosaic_0001>
module attributes {stable_mosaic.version = 11 : i64} {
  func.func @_refine_kernel(%arg0: i32, %arg1: memref<1x256xf32, #tpu.memory_space<vmem>>, %arg2: memref<16x1xf32, #tpu.memory_space<vmem>>, %arg3: memref<16x1xf32, #tpu.memory_space<vmem>>, %arg4: memref<16x16xf32, #tpu.memory_space<vmem>>, %arg5: memref<16x1xf32, #tpu.memory_space<vmem>>, %arg6: memref<16x16xf32, #tpu.memory_space<vmem>>, %arg7: memref<16x1xf32, #tpu.memory_space<vmem>>, %arg8: memref<1x16xf32, #tpu.memory_space<vmem>>, %arg9: memref<1x1xf32, #tpu.memory_space<vmem>>, %arg10: memref<1x256xf32, #tpu.memory_space<vmem>>) attributes {dimension_semantics = [#tpu.dimension_semantics<parallel>], iteration_bounds = array<i64: 2>, scalar_prefetch = 0 : i64, scratch_operands = 0 : i64, tpu.core_type = #tpu.core_type<tc>, window_params = [{transform_indices = @transform_0, window_bounds = array<i64: 1, 256>}, {pipeline_mode = #tpu.pipeline_mode<synchronous>, transform_indices = @transform_1, window_bounds = array<i64: 16, 1>}, {pipeline_mode = #tpu.pipeline_mode<synchronous>, transform_indices = @transform_2, window_bounds = array<i64: 16, 1>}, {pipeline_mode = #tpu.pipeline_mode<synchronous>, transform_indices = @transform_3, window_bounds = array<i64: 16, 16>}, {pipeline_mode = #tpu.pipeline_mode<synchronous>, transform_indices = @transform_4, window_bounds = array<i64: 16, 1>}, {pipeline_mode = #tpu.pipeline_mode<synchronous>, transform_indices = @transform_5, window_bounds = array<i64: 16, 16>}, {pipeline_mode = #tpu.pipeline_mode<synchronous>, transform_indices = @transform_6, window_bounds = array<i64: 16, 1>}, {pipeline_mode = #tpu.pipeline_mode<synchronous>, transform_indices = @transform_7, window_bounds = array<i64: 1, 16>}, {pipeline_mode = #tpu.pipeline_mode<synchronous>, transform_indices = @transform_8, window_bounds = array<i64: 1, 1>}, {transform_indices = @transform_9, window_bounds = array<i64: 1, 256>}]} {
    %c0 = arith.constant 0 : index
    %c0_0 = arith.constant 0 : index
    %0 = vector.load %arg1[%c0, %c0_0] : memref<1x256xf32, #tpu.memory_space<vmem>>, vector<1x256xf32>
    %c0_1 = arith.constant 0 : index
    %c0_2 = arith.constant 0 : index
    %1 = vector.load %arg2[%c0_1, %c0_2] : memref<16x1xf32, #tpu.memory_space<vmem>>, vector<16x1xf32>
    %2 = vector.broadcast %1 : vector<16x1xf32> to vector<16x256xf32>
    %3 = vector.broadcast %0 : vector<1x256xf32> to vector<16x256xf32>
    %4 = arith.mulf %2, %3 : vector<16x256xf32>
    %c0_3 = arith.constant 0 : index
    %c0_4 = arith.constant 0 : index
    %5 = vector.load %arg3[%c0_3, %c0_4] : memref<16x1xf32, #tpu.memory_space<vmem>>, vector<16x1xf32>
    %6 = vector.broadcast %5 : vector<16x1xf32> to vector<16x256xf32>
    %7 = arith.addf %4, %6 : vector<16x256xf32>
    %cst = arith.constant 0.000000e+00 : f32
    %8 = vector.broadcast %cst : f32 to vector<16x256xf32>
    %9 = arith.cmpf ogt, %7, %8 : vector<16x256xf32>
    %cst_5 = arith.constant 1.000000e-01 : f32
    %10 = vector.broadcast %cst_5 : f32 to vector<16x256xf32>
    %11 = arith.mulf %10, %7 : vector<16x256xf32>
    %12 = arith.select %9, %7, %11 : vector<16x256xi1>, vector<16x256xf32>
    %c0_6 = arith.constant 0 : index
    %c0_7 = arith.constant 0 : index
    %13 = vector.load %arg4[%c0_6, %c0_7] : memref<16x16xf32, #tpu.memory_space<vmem>>, vector<16x16xf32>
    %cst_8 = arith.constant dense<0.000000e+00> : vector<16x256xf32>
    %14 = tpu.matmul %13, %12, %cst_8 {dimension_numbers = #tpu.dot_dimension_numbers<[1], [0], [0], [1], [0, 0, 1, 1], [], []>} : vector<16x16xf32>, vector<16x256xf32>, vector<16x256xf32> -> vector<16x256xf32>
    %c0_9 = arith.constant 0 : index
    %c0_10 = arith.constant 0 : index
    %15 = vector.load %arg5[%c0_9, %c0_10] : memref<16x1xf32, #tpu.memory_space<vmem>>, vector<16x1xf32>
    %16 = vector.broadcast %15 : vector<16x1xf32> to vector<16x256xf32>
    %17 = arith.addf %14, %16 : vector<16x256xf32>
    %cst_11 = arith.constant 0.000000e+00 : f32
    %18 = vector.broadcast %cst_11 : f32 to vector<16x256xf32>
    %19 = arith.cmpf ogt, %17, %18 : vector<16x256xf32>
    %cst_12 = arith.constant 1.000000e-01 : f32
    %20 = vector.broadcast %cst_12 : f32 to vector<16x256xf32>
    %21 = arith.mulf %20, %17 : vector<16x256xf32>
    %22 = arith.select %19, %17, %21 : vector<16x256xi1>, vector<16x256xf32>
    %c0_13 = arith.constant 0 : index
    %c0_14 = arith.constant 0 : index
    %23 = vector.load %arg6[%c0_13, %c0_14] : memref<16x16xf32, #tpu.memory_space<vmem>>, vector<16x16xf32>
    %cst_15 = arith.constant dense<0.000000e+00> : vector<16x256xf32>
    %24 = tpu.matmul %23, %22, %cst_15 {dimension_numbers = #tpu.dot_dimension_numbers<[1], [0], [0], [1], [0, 0, 1, 1], [], []>} : vector<16x16xf32>, vector<16x256xf32>, vector<16x256xf32> -> vector<16x256xf32>
    %c0_16 = arith.constant 0 : index
    %c0_17 = arith.constant 0 : index
    %25 = vector.load %arg7[%c0_16, %c0_17] : memref<16x1xf32, #tpu.memory_space<vmem>>, vector<16x1xf32>
    %26 = vector.broadcast %25 : vector<16x1xf32> to vector<16x256xf32>
    %27 = arith.addf %24, %26 : vector<16x256xf32>
    %cst_18 = arith.constant 0.000000e+00 : f32
    %28 = vector.broadcast %cst_18 : f32 to vector<16x256xf32>
    %29 = arith.cmpf ogt, %27, %28 : vector<16x256xf32>
    %cst_19 = arith.constant 1.000000e-01 : f32
    %30 = vector.broadcast %cst_19 : f32 to vector<16x256xf32>
    %31 = arith.mulf %30, %27 : vector<16x256xf32>
    %32 = arith.select %29, %27, %31 : vector<16x256xi1>, vector<16x256xf32>
    %c0_20 = arith.constant 0 : index
    %c0_21 = arith.constant 0 : index
    %33 = vector.load %arg8[%c0_20, %c0_21] : memref<1x16xf32, #tpu.memory_space<vmem>>, vector<1x16xf32>
    %cst_22 = arith.constant dense<0.000000e+00> : vector<1x256xf32>
    %34 = tpu.matmul %33, %32, %cst_22 {dimension_numbers = #tpu.dot_dimension_numbers<[1], [0], [0], [1], [0, 0, 1, 1], [], []>} : vector<1x16xf32>, vector<16x256xf32>, vector<1x256xf32> -> vector<1x256xf32>
    %c0_23 = arith.constant 0 : index
    %c0_24 = arith.constant 0 : index
    %35 = vector.load %arg9[%c0_23, %c0_24] : memref<1x1xf32, #tpu.memory_space<vmem>>, vector<1x1xf32>
    %36 = vector.broadcast %35 : vector<1x1xf32> to vector<1x256xf32>
    %37 = arith.addf %34, %36 : vector<1x256xf32>
    %38 = math.absf %37 : vector<1x256xf32>
    %cst_25 = arith.constant 0.000000e+00 : f32
    %39 = vector.broadcast %cst_25 : f32 to vector<1x256xf32>
    %40 = arith.subf %39, %38 : vector<1x256xf32>
    %41 = math.exp %40 : vector<1x256xf32>
    %cst_26 = arith.constant 0.000000e+00 : f32
    %42 = vector.broadcast %cst_26 : f32 to vector<1x256xf32>
    %43 = arith.cmpf oge, %37, %42 : vector<1x256xf32>
    %cst_27 = arith.constant 1.000000e+00 : f32
    %44 = vector.broadcast %cst_27 : f32 to vector<1x256xf32>
    %45 = arith.addf %44, %41 : vector<1x256xf32>
    %cst_28 = arith.constant 1.000000e+00 : f32
    %46 = vector.broadcast %cst_28 : f32 to vector<1x256xf32>
    %47 = arith.divf %46, %45 : vector<1x256xf32>
    %cst_29 = arith.constant 1.000000e+00 : f32
    %48 = vector.broadcast %cst_29 : f32 to vector<1x256xf32>
    %49 = arith.addf %48, %41 : vector<1x256xf32>
    %50 = arith.divf %41, %49 : vector<1x256xf32>
    %51 = arith.select %43, %47, %50 : vector<1x256xi1>, vector<1x256xf32>
    %c0_30 = arith.constant 0 : index
    %c0_31 = arith.constant 0 : index
    %52 = vector.load %arg10[%c0_30, %c0_31] : memref<1x256xf32, #tpu.memory_space<vmem>>, vector<1x256xf32>
    tpu.vector_store %arg10[%c0_30, %c0_31], %51 {strides = array<i32>} : memref<1x256xf32, #tpu.memory_space<vmem>>, vector<1x256xf32>,
    return
  }
  func.func @transform_0(%arg0: i32) -> (i32, i32) {
    %c0_i32 = arith.constant 0 : i32
    %c0_i32_0 = arith.constant 0 : i32
    return %c0_i32, %arg0 : i32, i32
  }
  func.func @transform_1(%arg0: i32) -> (i32, i32) {
    %c0_i32 = arith.constant 0 : i32
    %c0_i32_0 = arith.constant 0 : i32
    %c0_i32_1 = arith.constant 0 : i32
    return %c0_i32, %c0_i32_0 : i32, i32
  }
  func.func @transform_2(%arg0: i32) -> (i32, i32) {
    %c0_i32 = arith.constant 0 : i32
    %c0_i32_0 = arith.constant 0 : i32
    %c0_i32_1 = arith.constant 0 : i32
    return %c0_i32, %c0_i32_0 : i32, i32
  }
  func.func @transform_3(%arg0: i32) -> (i32, i32) {
    %c0_i32 = arith.constant 0 : i32
    %c0_i32_0 = arith.constant 0 : i32
    %c0_i32_1 = arith.constant 0 : i32
    return %c0_i32, %c0_i32_0 : i32, i32
  }
  func.func @transform_4(%arg0: i32) -> (i32, i32) {
    %c0_i32 = arith.constant 0 : i32
    %c0_i32_0 = arith.constant 0 : i32
    %c0_i32_1 = arith.constant 0 : i32
    return %c0_i32, %c0_i32_0 : i32, i32
  }
  func.func @transform_5(%arg0: i32) -> (i32, i32) {
    %c0_i32 = arith.constant 0 : i32
    %c0_i32_0 = arith.constant 0 : i32
    %c0_i32_1 = arith.constant 0 : i32
    return %c0_i32, %c0_i32_0 : i32, i32
  }
  func.func @transform_6(%arg0: i32) -> (i32, i32) {
    %c0_i32 = arith.constant 0 : i32
    %c0_i32_0 = arith.constant 0 : i32
    %c0_i32_1 = arith.constant 0 : i32
    return %c0_i32, %c0_i32_0 : i32, i32
  }
  func.func @transform_7(%arg0: i32) -> (i32, i32) {
    %c0_i32 = arith.constant 0 : i32
    %c0_i32_0 = arith.constant 0 : i32
    %c0_i32_1 = arith.constant 0 : i32
    return %c0_i32, %c0_i32_0 : i32, i32
  }
  func.func @transform_8(%arg0: i32) -> (i32, i32) {
    %c0_i32 = arith.constant 0 : i32
    %c0_i32_0 = arith.constant 0 : i32
    %c0_i32_1 = arith.constant 0 : i32
    return %c0_i32, %c0_i32_0 : i32, i32
  }
  func.func @transform_9(%arg0: i32) -> (i32, i32) {
    %c0_i32 = arith.constant 0 : i32
    %c0_i32_0 = arith.constant 0 : i32
    return %c0_i32, %arg0 : i32, i32
  }
}

</mosaic_0001>

<bundles_post_ra>
// kernel: tpu_custom_call.1
= control target key start
LH: loop header
LB: loop body
LE: loop exit
PB: predicated region body
PF: predicated region fallthrough
CT: control target
= control target key end

     0   :  { %s1168_s0 = inlined_call_operand.vmem [shape: f32[1,512], index: 0, kind: input, shape index: {}]   ;;  %s1169_s1 = inlined_call_operand.vmem [shape: f32[16,1], index: 1, kind: input, shape index: {}]   ;;  %s1170_s2 = inlined_call_operand.vmem [shape: f32[16,1], index: 2, kind: input, shape index: {}]   ;;  %s1171_s3 = inlined_call_operand.vmem [shape: f32[16,16], index: 3, kind: input, shape index: {}]   ;;  %s1172_s4 = inlined_call_operand.vmem [shape: f32[16,1], index: 4, kind: input, shape index: {}]   ;;  %s1173_s5 = inlined_call_operand.vmem [shape: f32[16,16], index: 5, kind: input, shape index: {}]   ;;  %s1174_s6 = inlined_call_operand.vmem [shape: f32[16,1], index: 6, kind: input, shape index: {}]   ;;  %s1175_s7 = inlined_call_operand.vmem [shape: f32[1,16], index: 7, kind: input, shape index: {}]   ;;  %s1176_s8 = inlined_call_operand.<no memory space> [shape: f32[1,1], index: 8, kind: input, shape index: {}]   ;;  %s1177_s9 = inlined_call_operand.hbm [shape: f32[1,512], index: 9, kind: output, shape index: {}]  }
   0x1   :  { %v14_v0 = vstv %s1176_s8 }
   0x2   :  { %15 = vst [vmem:[#allocation2] sm:$0x1] %v14_v0 }
   0x3   :  { %16 = vsyncpa [#allocation4], 0 }
   0x4   :  { %18 = vsyncpa [#allocation4 + $0x1], 0  ;;  %s1009_s11 = smov 0   ;;  %s1011_s12 = smov 0  }
   0x5   :  { %s1013_s13 = smov 0   ;;  %s1015_s14 = smov 0  }
   0x6 LB: > { %s1030_s8 = sadd.s32 4294967295, %s950_s14   ;;  %s807_s15 = sadd.s32 4294967294, %s950_s14   ;;  %s950_s14 = sphi %s1015_s14, %s1183_s14   ;;  %s946_s13 = sphi %s1013_s13, %s1182_s13   ;;  %s942_s12 = sphi %s1011_s12, %s1181_s12   ;;  %s938_s11 = sphi %s1009_s11, %s1180_s11  }
   0x7   : > { %s1034_s16 = sadd.s32 1, %s950_s14   ;;  %s225_s17 = sadd.s32 1, %s946_s13 }
   0x8   : > { %s222_s18 = ssub.s32 %s950_s14, %s1034_s16  ;;  %p235_p0 = scmp.ne.s32.totalorder %s946_s13, %s942_s12 }
   0x9   : > { %p223_p1 = scmp.eq.s32.totalorder %s222_s18, 0  ;;  %p236_p2 = scmp.eq.s32.totalorder %s1030_s8, 1 }
   0xa   : > { %p241_p3 = scmp.ne.s32.totalorder %s942_s12, %s938_s11  ;;  %p242_p4 = scmp.eq.s32.totalorder %s807_s15, 1 }
   0xb   : > { %s1045_s19 = scalar_select %p223_p1, %s946_s13, %s225_s17  }
   0xc   : > { %p1047_p5 = por %p236_p2, %p235_p0  ;;  %p1051_p6 = por %p242_p4, %p241_p3 }
   0xd   : > { %p810_p7 = scmp.ge.s32.totalorder %s950_s14, 1  ;;  %p292_p8 = scmp.lt.s32.totalorder %s950_s14, 3 }
   0xf   : > { %p293_p9 = pnand %p810_p7, %p292_p8 }
  0x10   : > { %v361_v1 = vld [vmem:[%s1170_s2] sm:$0xff] (!%p293_p9)  ;;  %v952_v3 = vmov (!%p293_p9), 0   ;;  %v362_v4 = vld [vmem:[%s1170_s2 + $0x8] sm:$0xff] (!%p293_p9)  ;;  %v953_v11 = vmov (!%p293_p9), 0.0   ;;  %s812_s25 = sshll.u32 (!%p293_p9), %s1030_s8, 1  ;;  %v347_v12 = vlaneseq (!%p293_p9)  ;;  %vm403_vm4 = vcmask (!%p293_p9), 130048  }
  0x11   : > { %296 = sbr.rel (%p293_p9) target bundleno = 887 (0x377), region = 56  ;;  %v334_v2 = vld [vmem:[%s1169_s1] sm:$0xff] (!%p293_p9)  ;;  %879 = vset.pattern.permute.xlu1 (!%p293_p9), %v952_v3  ;;  %878 = vset.pattern.permute.xlu0 (!%p293_p9), %v952_v3  ;;  %v335_v5 = vld [vmem:[%s1169_s1 + $0x8] sm:$0xff] (!%p293_p9)  ;;  %p328_p10 = scmp.lt.s32.totalorder (!%p293_p9), %s812_s25, 3 }
  0x12   : > { %365 = vperm.xlu1 (!%p293_p9), %879, %v361_v1   ;;  %338 = vperm.xlu0 (!%p293_p9), %878, %v334_v2   ;;  %v392_v6 = vld [vmem:[%s1172_s4 + $0x8] sm:$0xff] (!%p293_p9)  ;;  %v391_v7 = vld [vmem:[%s1172_s4] sm:$0xff] (!%p293_p9)  ;;  %v1085_v13 = vshrl.u32 (!%p293_p9), %v347_v12, 7  ;;  %s324_s26 = sand.u32 (!%p293_p9), 1, %s942_s12   ;;  %vm733_vm15 = vcmp.lt.s32.totalorder (!%p293_p9), %v347_v12, 256 }
  0x13   : > { %v502_v8 = vld [vmem:[%s1174_s6 + $0x8] sm:$0xff] (!%p293_p9)  ;;  %v501_v9 = vld [vmem:[%s1174_s6] sm:$0xff] (!%p293_p9)  ;;  %474 = vmatprep.mubr.f32.mxu0 (!%p293_p9), %v953_v11  ;;  %583 = vmatprep.mubr.f32.mxu1 (!%p293_p9), %v953_v11  ;;  %s811_s27 = sshll.u32 (!%p293_p9), %s324_s26, 1  ;;  %s737_s18 = scalar_lea.sflag (!%p293_p9), [#allocation4], %s324_s26 }
  0x14   : > { %v609_v10 = vld [vmem:[#allocation2] sm:$0x1] (!%p293_p9)  ;;  %v349_v14 = vsub.s32 (!%p293_p9), 0, %v1085_v13  ;;  %v353_v15 = vsub.s32 (!%p293_p9), 1, %v1085_v13  ;;  %v390_v42 = vld [vmem:[%s1171_s3 + $0x8] sm:$0xff] (!%p293_p9)  ;;  %s326_s29 = scalar_lea.vmem (!%p293_p9), [#allocation3], %s811_s27 }
  0x15   : > { %v389_v41 = vld [vmem:[%s1171_s3] sm:$0xff] (!%p293_p9)  ;;  %v500_v0 = vld [vmem:[%s1173_s5 + $0x8] sm:$0xff] (!%p293_p9)  ;;  %s751_s30 = sshll.u32 (!%p293_p9), %s326_s29, 4  ;;  %s1128_s30 = int_to_ptr.vmem [resolvable:$true] %s751_s30 }
  0x16   : > { %370 = vperm.xlu1 (!%p293_p9), %879, %v362_v4   ;;  %343 = vperm.xlu0 (!%p293_p9), %878, %v335_v5   ;;  %v499_v63 = vld [vmem:[%s1173_s5] sm:$0xff] (!%p293_p9)  ;;  %s888_s22 = scalar_lea.vmem (!%p293_p9), %s1128_s30, 32 }
  0x17   : > { %p889_p11 = scmp.ne.s32.totalorder (!%p293_p9), %s1128_s30, %s888_s22 }
  0x18   : > { %s1185_s25 = smov (!%p328_p10, %s812_s25), 3 }
  0x19   : > { %s330_s28 = scalar_lea.vmem %s1168_s0, %s1185_s25  ;;  %p890_p12 = pnand %p889_p11, %p1047_p5 }
  0x1a   : > { %400 = vperm.xlu1 %879, %v392_v6   ;;  %395 = vperm.xlu0 %878, %v391_v7   ;;  %v333_v16 = vld [vmem:[%s330_s28] sm:$0x3]  ;;  %s823_s28 = sshll.u32 %s1030_s8, 5  ;;  %s955_s8 = smov [#allocation3]  }
  0x1b   : > { %v350_v17 = vrot.slane %v333_v16, %v349_v14  ;;  %v354_v18 = vrot.slane %v333_v16, %v353_v15  ;;  %s1126_s17 = scalar_lea.hbm %s1177_s9, %s823_s28  ;;  %p891_p13 = pneg %p890_p12 }
  0x1c   : > { %s892_s23 = sshll.u32 %s955_s8, 4  ;;  %s893_s23 = int_to_ptr.vmem [resolvable:$false] %s892_s23 }
  0x1d   : > { %s894_s24 = scalar_lea.vmem %s893_s23, 64  ;;  %p895_p0 = scmp.lt.s32.totalorder %s1128_s30, %s893_s23 }
  0x1e   : > { %510 = vperm.xlu1 %879, %v502_v8   ;;  %505 = vperm.xlu0 %878, %v501_v9   ;;  %p896_p1 = scmp.lt.s32.totalorder %s894_s24, %s888_s22 }
  0x20   : > { %p897_p2 = por %p896_p1, %p895_p0 }
  0x22   : > { %612 = vperm.xlu0 %878, %v609_v10   ;;  %p898_p3 = pnand %p897_p2, %p891_p13 }
  0x91   : > { %v366_v19 = vpop.permute.xlu1 %365  ;;  %v339_v20 = vpop.permute.xlu0 %338 }
  0x92   : > { %v357_v21 = vmul.f32 %v350_v17, %v339_v20  ;;  %v358_v22 = vmul.f32 %v354_v18, %v339_v20 }
  0x94   : > { %v373_v23 = vadd.f32 %v366_v19, %v357_v21  ;;  %v374_v24 = vadd.f32 %v366_v19, %v358_v22 }
  0x95   : > { %v344_v25 = vpop.permute.xlu0 %343  ;;  %v371_v28 = vpop.permute.xlu1 %370 }
  0x96   : > { %v359_v26 = vmul.f32 %v350_v17, %v344_v25  ;;  %v360_v27 = vmul.f32 %v354_v18, %v344_v25  ;;  %v382_v31 = vmul.f32 0.1, %v374_v24  ;;  %v381_v32 = vmul.f32 0.1, %v373_v23 }
  0x97   : > { %vm378_vm0 = vcmp.gt.f32.partialorder %v374_v24, 0.0  ;;  %vm377_vm1 = vcmp.gt.f32.partialorder %v373_v23, 0.0 }
  0x98   : > { %v375_v29 = vadd.f32 %v371_v28, %v359_v26  ;;  %v376_v30 = vadd.f32 %v371_v28, %v360_v27  ;;  %v386_v35 = vsel %vm378_vm0, %v374_v24, %v382_v31  ;;  %v385_v37 = vsel %vm377_vm1, %v373_v23, %v381_v32  ;;  %v608_v24 = vld [vmem:[%s1175_s7] sm:$0x1] }
  0x99   : > { %v396_v43 = vpop.permute.xlu0 %395  ;;  %v401_v48 = vpop.permute.xlu1 %400 }
  0x9a   : > { %vm380_vm2 = vcmp.gt.f32.partialorder %v376_v30, 0.0  ;;  %v384_v33 = vmul.f32 0.1, %v376_v30  ;;  %vm379_vm3 = vcmp.gt.f32.partialorder %v375_v29, 0.0  ;;  %v383_v34 = vmul.f32 0.1, %v375_v29 }
  0x9c   : > { %v388_v36 = vsel %vm380_vm2, %v376_v30, %v384_v33  ;;  %v387_v38 = vsel %vm379_vm3, %v375_v29, %v383_v34 }
  0x9d   : > { %v824_v39 = vpack.c.bf16 %v388_v36, %v386_v35  ;;  %v826_v40 = vpack.c.bf16 %v387_v38, %v385_v37  ;;  %v506_v1 = vpop.permute.xlu0 %505  ;;  %v511_v6 = vpop.permute.xlu1 %510 }
  0x9f   : > { %825 = vmatprep.subr.bf16.mxu0 %v824_v39 }
  0xa0   : > { %827 = vmatpush1.bf16.msra.mxu0 %v826_v40 }
  0xa1   : > { %v613_v25 = vpop.permute.xlu0 %612 }
  0xa2   : > { %v618_v26 = vrot.slane %v613_v25, %v349_v14  ;;  %v954_v14 = vmov 1966171168  }
  0xa3   : > { %813 = vmatmul.mubr.msk.f32.vlgmr.msra.gmra.mrb[0].mxu0 %vm403_vm4, %v389_v41  ;;  %v717_v41 = vunpack.c.l.s4 %v954_v14 }
  0xa4   : > { %480 = vmatprep.mubr.f32.mxu0 %v953_v11 }
  0xa7   : > { %814 = vmatmul.mubr.msk.f32.gmra.mrb[2].mxu0 %vm403_vm4, %v390_v42  ;;  %v718_v42 = vunpack.c.0.s8 %v717_v41 }
  0xa8   : > { %686 = vmatprep.mubr.f32.mxu0 %v953_v11 }
 0x176   : > { %v476_v44 = vpop.f32.mrb[0].mxu0 }
 0x177   : > { %v477_v45 = vadd.f32 %v476_v44, %v396_v43  ;;  %v478_v46 = vpop.f32.mrb[1].mxu0 }
 0x178   : > { %v479_v47 = vadd.f32 %v478_v46, %v396_v43 }
 0x179   : > { %v491_v50 = vmul.f32 0.1, %v477_v45  ;;  %vm487_vm5 = vcmp.gt.f32.partialorder %v477_v45, 0.0 }
 0x17a   : > { %v482_v49 = vpop.f32.mrb[2].mxu0  ;;  %v492_v53 = vmul.f32 0.1, %v479_v47  ;;  %vm488_vm6 = vcmp.gt.f32.partialorder %v479_v47, 0.0 }
 0x17b   : > { %v483_v51 = vadd.f32 %v482_v49, %v401_v48  ;;  %v484_v52 = vpop.f32.mrb[3].mxu0  ;;  %v495_v57 = vsel %vm487_vm5, %v477_v45, %v491_v50 }
 0x17c   : > { %v485_v54 = vadd.f32 %v484_v52, %v401_v48  ;;  %v496_v59 = vsel %vm488_vm6, %v479_v47, %v492_v53  ;;  %v721_v48 = vsub.s32 %v718_v42, %v1085_v13 }
 0x17d   : > { %v493_v55 = vmul.f32 0.1, %v483_v51  ;;  %vm489_vm7 = vcmp.gt.f32.partialorder %v483_v51, 0.0 }
 0x17e   : > { %v494_v56 = vmul.f32 0.1, %v485_v54  ;;  %vm490_vm8 = vcmp.gt.f32.partialorder %v485_v54, 0.0 }
 0x17f   : > { %v497_v58 = vsel %vm489_vm7, %v483_v51, %v493_v55 }
 0x180   : > { %v498_v60 = vsel %vm490_vm8, %v485_v54, %v494_v56  ;;  %v830_v61 = vpack.c.bf16 %v497_v58, %v495_v57 }
 0x181   : > { %v828_v62 = vpack.c.bf16 %v498_v60, %v496_v59 }
 0x183   : > { %829 = vmatprep.subr.bf16.mxu1 %v828_v62 }
 0x184   : > { %831 = vmatpush1.bf16.msra.mxu1 %v830_v61 }
 0x187   : > { %815 = vmatmul.mubr.msk.f32.vlgmr.msra.gmra.mrb[0].mxu1 %vm403_vm4, %v499_v63 }
 0x188   : > { %589 = vmatprep.mubr.f32.mxu1 %v953_v11 }
 0x18b   : > { %816 = vmatmul.mubr.msk.f32.gmra.mrb[2].mxu1 %vm403_vm4, %v500_v0 }
 0x25a   : > { %v585_v2 = vpop.f32.mrb[0].mxu1 }
 0x25b   : > { %v586_v3 = vadd.f32 %v585_v2, %v506_v1  ;;  %v587_v4 = vpop.f32.mrb[1].mxu1 }
 0x25c   : > { %v588_v5 = vadd.f32 %v587_v4, %v506_v1 }
 0x25d   : > { %v600_v8 = vmul.f32 0.1, %v586_v3  ;;  %vm596_vm9 = vcmp.gt.f32.partialorder %v586_v3, 0.0 }
 0x25e   : > { %v591_v7 = vpop.f32.mrb[2].mxu1  ;;  %v601_v15 = vmul.f32 0.1, %v588_v5  ;;  %vm597_vm10 = vcmp.gt.f32.partialorder %v588_v5, 0.0 }
 0x25f   : > { %v592_v9 = vadd.f32 %v591_v7, %v511_v6  ;;  %v593_v10 = vpop.f32.mrb[3].mxu1  ;;  %v604_v18 = vsel %vm596_vm9, %v586_v3, %v600_v8 }
 0x260   : > { %v594_v16 = vadd.f32 %v593_v10, %v511_v6  ;;  %v605_v21 = vsel %vm597_vm10, %v588_v5, %v601_v15 }
 0x261   : > { %vm598_vm11 = vcmp.gt.f32.partialorder %v592_v9, 0.0  ;;  %v602_v11 = vmul.f32 0.1, %v592_v9 }
 0x262   : > { %vm599_vm12 = vcmp.gt.f32.partialorder %v594_v16, 0.0  ;;  %v603_v17 = vmul.f32 0.1, %v594_v16 }
 0x263   : > { %v606_v19 = vsel %vm598_vm11, %v592_v9, %v602_v11 }
 0x264   : > { %v834_v20 = vpack.c.bf16 %v606_v19, %v604_v18  ;;  %v607_v22 = vsel %vm599_vm12, %v594_v16, %v603_v17 }
 0x265   : > { %v832_v23 = vpack.c.bf16 %v607_v22, %v605_v21 }
 0x267   : > { %833 = vmatprep.subr.bf16.mxu0 %v832_v23 }
 0x268   : > { %835 = vmatpush1.bf16.msra.mxu0 %v834_v20 }
 0x26b   : > { %817 = vmatmul.mubr.msk.f32.vlgmr.msra.gmra.mrb[4].mxu0 %vm403_vm4, %v608_v24 }
 0x33e   : > { %v688_v27 = vpop.f32.mrb[4].mxu0 }
 0x33f   : > { %v689_v28 = vadd.f32 %v688_v27, %v618_v26  ;;  %v690_v29 = vpop.f32.mrb[5].mxu0 }
 0x340   : > { %v691_v30 = vadd.f32 %v690_v29, %v618_v26 }
 0x341   : > { %v693_v31 = vand.u32 2147483647, %v689_v28  ;;  %vm701_vm13 = vcmp.ge.f32.partialorder %v689_v28, 0.0 }
 0x342   : > { %v694_v32 = vand.u32 2147483647, %v691_v30  ;;  %vm702_vm14 = vcmp.ge.f32.partialorder %v691_v30, 0.0 }
 0x343   : > { %v695_v33 = vsub.f32 0.0, %v693_v31 }
 0x344   : > { %v696_v34 = vsub.f32 0.0, %v694_v32 }
 0x345   : > { %v697_v35 = vmul.f32 1.442695, %v695_v33 }
 0x346   : > { %v699_v36 = vmul.f32 1.442695, %v696_v34 }
 0x347   : > { %880 = vpow2.f32 %v697_v35 }
 0x348   : > { %882 = vpow2.f32 %v699_v36 }
 0x351   : > { %v881_v37 = vpop.eup %880 }
 0x352   : > { %v883_v38 = vpop.eup %882  ;;  %v703_v39 = vadd.f32 1.0, %v881_v37 }
 0x353   : > { %v704_v40 = vadd.f32 1.0, %v883_v38 }
 0x354   : > { %884 = vrcp.f32 %v703_v39 }
 0x355   : > { %886 = vrcp.f32 %v704_v40 }
 0x35e   : > { %v885_v43 = vpop.eup %884 }
 0x35f   : > { %v887_v44 = vpop.eup %886  ;;  %v709_v45 = vmul.f32 %v885_v43, %v881_v37 }
 0x360   : > { %v710_v46 = vmul.f32 %v887_v44, %v883_v38 }
 0x361   : > { %v711_v47 = vsel %vm701_vm13, %v885_v43, %v709_v45 }
 0x362   : > { %v712_v49 = vsel %vm702_vm14, %v887_v44, %v710_v46 }
 0x363   : > { %v715_v50 = vcombine.low %v711_v47, %v712_v49 }
 0x365   : > { %v722_v51 = vrot.slane %v715_v50, %v721_v48 }
 0x367   : > { %v729_v52 = vrot.slane %v722_v51, %v721_v48 }
 0x369   : > { %735 = vst.msk [vmem:[%s326_s29] sm:$0x3] %vm733_vm15, %v729_v52 }
 0x36a   : > { %901 = shalt.err (!%p898_p3)
}
 0x36b   : > { %s902_s25 = scalar_lea.hbm %s1126_s17, 32  ;;  %s906_s28 = scalar_lea.hbm %s1177_s9, 64 }
 0x36c   : > { %p903_p4 = scmp.ne.s32.totalorder %s1126_s17, %s902_s25  ;;  %p907_p9 = scmp.lt.u32.totalorder %s1126_s17, %s1177_s9 }
 0x36d   : > { %p908_p10 = scmp.lt.u32.totalorder %s906_s28, %s902_s25  ;;  %p910_p12 = scmp.lt.u32.totalorder %s902_s25, %s1126_s17 }
 0x36e   : > { %p904_p7 = pnand %p903_p4, %p1047_p5 }
 0x36f   : > { %p909_p11 = por %p908_p10, %p907_p9 }
 0x370   : > { %p905_p8 = pneg %p904_p7 }
 0x371   : > { %p911_p13 = por %p910_p12, %p909_p11 }
 0x373   : > { %p912_p0 = pnand %p911_p13, %p905_p8 }
 0x375   : > { %915 = shalt.err (!%p912_p0)
}
 0x376   : > { %836 = dma.vmem_to_hbm [thread:$0]  (%p1047_p5), %s1128_s30, 32, %s1126_s17, %s737_s18  }
 0x377 PF: > { %p842_p1 = scmp.ge.s32.totalorder %s950_s14, 2  ;;  %s763_s15 = sand.u32 1, %s938_s11  }
 0x378   : > { %s764_s22 = scalar_lea.sflag [#allocation4], %s763_s15 }
 0x379   : > { %p839_p2 = pnand %p842_p1, %p1051_p6 }
 0x37b   : > { %933 = dma.done.wait (!%p839_p2), %s764_s22, 32  }
 0x37c   : > { %935 = vsyncadd (!%p839_p2), %s764_s22, 4294967264  ;;  %p21_p3 = scmp.ge.s32.totalorder %s1034_s16, 4   ;;  %s1180_s11 = smov %s942_s12 }
 0x37d   : > { %s1181_s12 = smov %s946_s13  ;;  %s1182_s13 = smov %s1045_s19 }
 0x37e   : > { %s1183_s14 = smov %s1034_s16  ;;  %23 = sbr.rel (!%p21_p3) target bundleno = 6 (0x6), region = 91 }
 0x385   :  { %769 = vsyncpa [#allocation4], 1 }
 0x386   :  { %771 = vsyncpa [#allocation4 + $0x1], 1 }

</bundles_post_ra>
